<compile_context>
chip_gen: v7x
topology: tpu7x:2x2x1
jax: 0.10.0
libtpu: 0.0.40
codegen_flags: <defaults>
</compile_context>

<pallas_src>
import jax
import jax.numpy as jnp
from jax.experimental import pallas as pl
from jax.experimental.pallas import tpu as pltpu


def _vmem_spec():
    # Whole-array blocks resident in VMEM (all shapes here are tiny).
    return pl.BlockSpec(memory_space=pltpu.MemorySpace.VMEM)


# ----------------------------------------------------------------------------
# Wrapper: packs parameters block-diagonally and runs ONE fused pallas_call.
# ----------------------------------------------------------------------------
def encoder_atten_5layer(params, exec_x, exec_adj, file_x, file_adj):
    n = exec_x.shape[0]
    F = exec_x.shape[1]
    H1 = params["exec1"][0].shape[1]
    H2 = params["exec2"][0].shape[1]
    H3 = params["exec3"][0].shape[1]
    A = params["atten"]["w_fc"].shape[1]
    D = max(F, H1, H2, H3)                       # uniform block width (padded)

    dims = [(F, H1), (H1, H2), (H2, H3), (H3, H3), (H3, H3)]

    # ---- blocked weight / bias stacks (wrapper-side prep is free) ----------
    w_blocks, b_blocks = [], []
    for i, (fi, fo) in enumerate(dims):
        we, be = params[f"exec{i + 1}"]
        wb = jnp.zeros((2 * D, 2 * D), jnp.float32).at[:fi, :fo].set(we)
        bb = jnp.zeros((2 * n, 2 * D), jnp.float32)
        bb = bb.at[:n, :fo].set(jnp.broadcast_to(be, (n, fo)))
        if i < 4:                                 # fileEncoder5 output is dead
            wf, bf = params[f"file{i + 1}"]
            wb = wb.at[D:D + fi, D:D + fo].set(wf)
            bb = bb.at[n:, D:D + fo].set(jnp.broadcast_to(bf, (n, fo)))
        w_blocks.append(wb)
        b_blocks.append(bb)
    w_stack = jnp.stack(w_blocks).astype(jnp.bfloat16)   # (5, 2D, 2D)
    b_stack = jnp.stack(b_blocks)                         # (5, 2n, 2D) f32

    # ---- block-diagonal inputs ----------------------------------------------
    x_blk = jnp.zeros((2 * n, 2 * D), jnp.float32)
    x_blk = x_blk.at[:n, :F].set(exec_x).at[n:, D:D + F].set(file_x)
    x_blk = x_blk.astype(jnp.bfloat16)

    adj_blk = jnp.zeros((2 * n, 2 * n), jnp.float32)
    adj_blk = adj_blk.at[:n, :n].set(exec_adj).at[n:, n:].set(file_adj)
    adj_blk = adj_blk.astype(jnp.bfloat16)

    # ---- attention bundle: weights (bf16) + small vector params (f32) ------
    att_w = params["atten"]["w_fc"].astype(jnp.bfloat16)          # (H3+F, A)
    att_v = jnp.concatenate(
        [params["atten"]["b_fc"].reshape(1, A),
         params["atten"]["w_at"].reshape(1, A),
         jnp.pad(params["atten"]["b_at"].reshape(1, 1), ((0, 0), (0, A - 1)))],
        axis=0)                                                    # (3, A)

    # ---- lane-dense output slab layout --------------------------------------
    total = ((3 * H3 + 2 + 127) // 128) * 128
    a_w = total - 3 * H3

    # ------------------------------------------------------------------------
    def kernel(x_ref, adj_ref, w_ref, b_ref, attw_ref, attv_ref, out_ref):
        adj = adj_ref[...]                       # bf16 (2n, 2n)

        def gcn_blocked(h, i, relu):
            xw = jnp.dot(h.astype(jnp.bfloat16), w_ref[i],
                         preferred_element_type=jnp.float32)
            out = jnp.dot(adj, xw.astype(jnp.bfloat16),
                          preferred_element_type=jnp.float32) + b_ref[i]
            return jnp.maximum(out, 0.0) if relu else out

        # 4 merged exec|file layers + blocked exec layer 5 (file block = 0).
        h = gcn_blocked(x_ref[...], 0, True)
        h = gcn_blocked(h, 1, True)
        h = gcn_blocked(h, 2, True)
        h4 = gcn_blocked(h, 3, True)
        z5 = gcn_blocked(h4, 4, False)

        # Fold the block-diagonal tiles into row-stacked (2n, ...) arrays
        # (off-diagonal blocks are exactly zero, so "+" is a selection).
        z_stack = z5[:, :H3] + h4[:, D:D + H3]            # rows<n: z_exec, rows>=n: z_file
        x_stack = x_ref[...][:, :F] + x_ref[...][:, D:D + F]   # bf16

        # ---- attention fusion (concat-free, row-stacked) ----
        attv = attv_ref[...]
        bfc = attv[0:1, :]
        wat = attv[1:2, :]
        bat = attv[2:3, 0:1]
        h_att = jnp.tanh(
            jnp.dot(z_stack.astype(jnp.bfloat16), attw_ref[:H3, :],
                    preferred_element_type=jnp.float32)
            + jnp.dot(x_stack, attw_ref[H3:H3 + F, :],
                      preferred_element_type=jnp.float32)
            + bfc)
        # scores via VPU multiply + lane reduction (no 1-column MXU matmul)
        s = jnp.sum(h_att * wat, axis=-1, keepdims=True) + bat     # (2n, 1)
        s1, s2 = s[:n], s[n:]
        m = jnp.maximum(s1, s2)
        e1 = jnp.exp(s1 - m)
        e2 = jnp.exp(s2 - m)
        inv = pl.reciprocal(e1 + e2, approx=True)   # EUP; a1+a2 ≈ 1 (2^-12 rel)
        a1, a2 = e1 * inv, e2 * inv

        z_exec_v = z_stack[:n]
        z_file_v = z_stack[n:]
        z_final = a1 * z_exec_v + a2 * z_file_v

        # single lane-dense slab: [z | z_exec | z_file | a1 a2 0...]
        col = jax.lax.broadcasted_iota(jnp.int32, (n, a_w), 1)
        a_pad = jnp.where(col == 0, a1, jnp.where(col == 1, a2, 0.0))
        out_ref[...] = jnp.concatenate(
            [z_final, z_exec_v, z_file_v, a_pad], axis=-1).astype(out_ref.dtype)

    slab = pl.pallas_call(
        kernel,
        out_shape=jax.ShapeDtypeStruct((n, total), jnp.float32),
        in_specs=[_vmem_spec()] * 6,
        out_specs=_vmem_spec(),
        compiler_params=pltpu.CompilerParams(vmem_limit_bytes=32 * 1024 * 1024),
    )(x_blk, adj_blk, w_stack, b_stack, att_w, att_v)

    z = slab[:, :H3]
    z_exec = slab[:, H3:2 * H3]
    z_file = slab[:, 2 * H3:3 * H3]
    atten_weight = slab[:, 3 * H3:3 * H3 + 2]
    return z, atten_weight, z_exec, z_file


# ----------------------------------------------------------------------------
# Pure-JAX reference (f32) for a tolerance check against the bf16 kernel.
# ----------------------------------------------------------------------------
def reference_forward(params, exec_x, exec_adj, file_x, file_adj):
    def gcn(x, adj, w, b, relu):
        out = adj @ (x @ w) + b
        return jnp.maximum(out, 0.0) if relu else out

    h = exec_x
    for i in range(1, 5):
        h = gcn(h, exec_adj, *params[f"exec{i}"], True)
    z_exec = gcn(h, exec_adj, *params["exec5"], False)

    g = file_x
    for i in range(1, 5):
        g = gcn(g, file_adj, *params[f"file{i}"], True)
    z_file = g                                   # PyTorch quirk: hid4_

    at = params["atten"]
    feat1 = jnp.concatenate([z_exec, exec_x], axis=1)
    feat2 = jnp.concatenate([z_file, file_x], axis=1)
    h1 = jnp.tanh(feat1 @ at["w_fc"] + at["b_fc"])
    h2 = jnp.tanh(feat2 @ at["w_fc"] + at["b_fc"])
    s1 = h1 @ at["w_at"] + at["b_at"]
    s2 = h2 @ at["w_at"] + at["b_at"]
    a = jax.nn.softmax(jnp.concatenate([s1, s2], axis=1), axis=1)
    z = a[:, :1] * z_exec + a[:, 1:2] * z_file
    return z, a, z_exec, z_file


# ----------------------------------------------------------------------------
# Parameter construction (deterministic, in-script; no checkpoint load)
# ----------------------------------------------------------------------------
def _gcn_params(key, f_in, f_out):
    kw, kb = jax.random.split(key)
    stdv = 1.0 / jnp.sqrt(jnp.float32(f_out))
    w = jax.random.uniform(kw, (f_in, f_out), jnp.float32, -stdv, stdv)
    b = jax.random.uniform(kb, (1, f_out), jnp.float32, -stdv, stdv)
    return (w, b)


def init_params(key, gcn_feature, gcn_hid1, gcn_hid2, gcn_hid3):
    keys = jax.random.split(key, 12)
    dims = [(gcn_feature, gcn_hid1), (gcn_hid1, gcn_hid2), (gcn_hid2, gcn_hid3),
            (gcn_hid3, gcn_hid3), (gcn_hid3, gcn_hid3)]
    params = {}
    for i, (fi, fo) in enumerate(dims):
        params[f"exec{i + 1}"] = _gcn_params(keys[i], fi, fo)
        params[f"file{i + 1}"] = _gcn_params(keys[5 + i], fi, fo)
    att_in = gcn_hid3 + gcn_feature
    att_hid = gcn_hid3 + gcn_feature
    k_fc, k_at = jax.random.split(keys[10])
    params["atten"] = {
        "w_fc": jax.random.normal(k_fc, (att_in, att_hid), jnp.float32) * 0.1,
        "b_fc": jnp.zeros((1, att_hid), jnp.float32),
        "w_at": jax.random.normal(k_at, (att_hid, 1), jnp.float32) * 0.1,
        "b_at": jnp.zeros((1, 1), jnp.float32),
    }
    return params


def _make_adj(key, n):
    a = jax.random.uniform(key, (n, n), jnp.float32)
    a = (a > 0.7).astype(jnp.float32) + jnp.eye(n, dtype=jnp.float32)
    return a / jnp.sum(a, axis=1, keepdims=True)


if __name__ == "__main__":
    key = jax.random.PRNGKey(0)
    k_p, k_xe, k_xf, k_ae, k_af = jax.random.split(key, 5)

    n_nodes = 16
    gcn_feature = 32
    gcn_hid1, gcn_hid2, gcn_hid3 = 32, 32, 32

    params = init_params(k_p, gcn_feature, gcn_hid1, gcn_hid2, gcn_hid3)

    exec_x = jax.random.normal(k_xe, (n_nodes, gcn_feature), jnp.float32)
    file_x = jax.random.normal(k_xf, (n_nodes, gcn_feature), jnp.float32)
    exec_adj = _make_adj(k_ae, n_nodes)
    file_adj = _make_adj(k_af, n_nodes)

    fwd = jax.jit(encoder_atten_5layer)
    z, atten_weight, z_exec, z_file = fwd(params, exec_x, exec_adj, file_x, file_adj)
    jax.block_until_ready((z, atten_weight, z_exec, z_file))

    assert z.shape == (n_nodes, gcn_hid3)
    assert atten_weight.shape == (n_nodes, 2)
    assert z_exec.shape == (n_nodes, gcn_hid3)
    assert z_file.shape == (n_nodes, gcn_hid3)
    assert bool(jnp.all(jnp.isfinite(z)))

    # Loose-tolerance check vs f32 reference (kernel matmuls are bf16).
    z_r, a_r, ze_r, zf_r = reference_forward(params, exec_x, exec_adj, file_x, file_adj)
    assert float(jnp.max(jnp.abs(z - z_r))) < 0.08
    assert float(jnp.max(jnp.abs(z_exec - ze_r))) < 0.08
    assert float(jnp.max(jnp.abs(z_file - zf_r))) < 0.08
    assert float(jnp.max(jnp.abs(atten_weight - a_r))) < 0.03

    print("KERNEL_OK")
</pallas_src>

<mosaic_0001>
module attributes {stable_mosaic.version = 11 : i64} {
  func.func @kernel(%arg0: memref<32x64xbf16, #tpu.memory_space<vmem>>, %arg1: memref<32x32xbf16, #tpu.memory_space<vmem>>, %arg2: memref<5x64x64xbf16, #tpu.memory_space<vmem>>, %arg3: memref<5x32x64xf32, #tpu.memory_space<vmem>>, %arg4: memref<64x64xbf16, #tpu.memory_space<vmem>>, %arg5: memref<3x64xf32, #tpu.memory_space<vmem>>, %arg6: memref<16x128xf32, #tpu.memory_space<vmem>>) attributes {dimension_semantics = [], scalar_prefetch = 0 : i64, scratch_operands = 0 : i64, tpu.core_type = #tpu.core_type<tc>} {
    %c0 = arith.constant 0 : index
    %c0_0 = arith.constant 0 : index
    %0 = vector.load %arg1[%c0, %c0_0] : memref<32x32xbf16, #tpu.memory_space<vmem>>, vector<32x32xbf16>
    %c0_1 = arith.constant 0 : index
    %c0_2 = arith.constant 0 : index
    %1 = vector.load %arg0[%c0_1, %c0_2] : memref<32x64xbf16, #tpu.memory_space<vmem>>, vector<32x64xbf16>
    %c0_3 = arith.constant 0 : index
    %c0_4 = arith.constant 0 : index
    %c0_5 = arith.constant 0 : index
    %2 = vector.load %arg2[%c0_3, %c0_4, %c0_5] : memref<5x64x64xbf16, #tpu.memory_space<vmem>>, vector<1x64x64xbf16>
    %3 = vector.shape_cast %2 : vector<1x64x64xbf16> to vector<64x64xbf16>
    %cst = arith.constant dense<0.000000e+00> : vector<32x64xf32>
    %4 = tpu.matmul %1, %3, %cst {dimension_numbers = #tpu.dot_dimension_numbers<[1], [0], [0], [1], [0, 0, 1, 1], [], []>} : vector<32x64xbf16>, vector<64x64xbf16>, vector<32x64xf32> -> vector<32x64xf32>
    %5 = arith.truncf %4 : vector<32x64xf32> to vector<32x64xbf16>
    %cst_6 = arith.constant dense<0.000000e+00> : vector<32x64xf32>
    %6 = tpu.matmul %0, %5, %cst_6 {dimension_numbers = #tpu.dot_dimension_numbers<[1], [0], [0], [1], [0, 0, 1, 1], [], []>} : vector<32x32xbf16>, vector<32x64xbf16>, vector<32x64xf32> -> vector<32x64xf32>
    %c0_7 = arith.constant 0 : index
    %c0_8 = arith.constant 0 : index
    %c0_9 = arith.constant 0 : index
    %7 = vector.load %arg3[%c0_7, %c0_8, %c0_9] : memref<5x32x64xf32, #tpu.memory_space<vmem>>, vector<1x32x64xf32>
    %8 = vector.shape_cast %7 : vector<1x32x64xf32> to vector<32x64xf32>
    %9 = arith.addf %6, %8 : vector<32x64xf32>
    %cst_10 = arith.constant 0.000000e+00 : f32
    %10 = vector.broadcast %cst_10 : f32 to vector<32x64xf32>
    %11 = arith.maximumf %9, %10 : vector<32x64xf32>
    %12 = arith.truncf %11 : vector<32x64xf32> to vector<32x64xbf16>
    %c1 = arith.constant 1 : index
    %c0_11 = arith.constant 0 : index
    %c0_12 = arith.constant 0 : index
    %13 = vector.load %arg2[%c1, %c0_11, %c0_12] : memref<5x64x64xbf16, #tpu.memory_space<vmem>>, vector<1x64x64xbf16>
    %14 = vector.shape_cast %13 : vector<1x64x64xbf16> to vector<64x64xbf16>
    %cst_13 = arith.constant dense<0.000000e+00> : vector<32x64xf32>
    %15 = tpu.matmul %12, %14, %cst_13 {dimension_numbers = #tpu.dot_dimension_numbers<[1], [0], [0], [1], [0, 0, 1, 1], [], []>} : vector<32x64xbf16>, vector<64x64xbf16>, vector<32x64xf32> -> vector<32x64xf32>
    %16 = arith.truncf %15 : vector<32x64xf32> to vector<32x64xbf16>
    %cst_14 = arith.constant dense<0.000000e+00> : vector<32x64xf32>
    %17 = tpu.matmul %0, %16, %cst_14 {dimension_numbers = #tpu.dot_dimension_numbers<[1], [0], [0], [1], [0, 0, 1, 1], [], []>} : vector<32x32xbf16>, vector<32x64xbf16>, vector<32x64xf32> -> vector<32x64xf32>
    %c1_15 = arith.constant 1 : index
    %c0_16 = arith.constant 0 : index
    %c0_17 = arith.constant 0 : index
    %18 = vector.load %arg3[%c1_15, %c0_16, %c0_17] : memref<5x32x64xf32, #tpu.memory_space<vmem>>, vector<1x32x64xf32>
    %19 = vector.shape_cast %18 : vector<1x32x64xf32> to vector<32x64xf32>
    %20 = arith.addf %17, %19 : vector<32x64xf32>
    %cst_18 = arith.constant 0.000000e+00 : f32
    %21 = vector.broadcast %cst_18 : f32 to vector<32x64xf32>
    %22 = arith.maximumf %20, %21 : vector<32x64xf32>
    %23 = arith.truncf %22 : vector<32x64xf32> to vector<32x64xbf16>
    %c2 = arith.constant 2 : index
    %c0_19 = arith.constant 0 : index
    %c0_20 = arith.constant 0 : index
    %24 = vector.load %arg2[%c2, %c0_19, %c0_20] : memref<5x64x64xbf16, #tpu.memory_space<vmem>>, vector<1x64x64xbf16>
    %25 = vector.shape_cast %24 : vector<1x64x64xbf16> to vector<64x64xbf16>
    %cst_21 = arith.constant dense<0.000000e+00> : vector<32x64xf32>
    %26 = tpu.matmul %23, %25, %cst_21 {dimension_numbers = #tpu.dot_dimension_numbers<[1], [0], [0], [1], [0, 0, 1, 1], [], []>} : vector<32x64xbf16>, vector<64x64xbf16>, vector<32x64xf32> -> vector<32x64xf32>
    %27 = arith.truncf %26 : vector<32x64xf32> to vector<32x64xbf16>
    %cst_22 = arith.constant dense<0.000000e+00> : vector<32x64xf32>
    %28 = tpu.matmul %0, %27, %cst_22 {dimension_numbers = #tpu.dot_dimension_numbers<[1], [0], [0], [1], [0, 0, 1, 1], [], []>} : vector<32x32xbf16>, vector<32x64xbf16>, vector<32x64xf32> -> vector<32x64xf32>
    %c2_23 = arith.constant 2 : index
    %c0_24 = arith.constant 0 : index
    %c0_25 = arith.constant 0 : index
    %29 = vector.load %arg3[%c2_23, %c0_24, %c0_25] : memref<5x32x64xf32, #tpu.memory_space<vmem>>, vector<1x32x64xf32>
    %30 = vector.shape_cast %29 : vector<1x32x64xf32> to vector<32x64xf32>
    %31 = arith.addf %28, %30 : vector<32x64xf32>
    %cst_26 = arith.constant 0.000000e+00 : f32
    %32 = vector.broadcast %cst_26 : f32 to vector<32x64xf32>
    %33 = arith.maximumf %31, %32 : vector<32x64xf32>
    %34 = arith.truncf %33 : vector<32x64xf32> to vector<32x64xbf16>
    %c3 = arith.constant 3 : index
    %c0_27 = arith.constant 0 : index
    %c0_28 = arith.constant 0 : index
    %35 = vector.load %arg2[%c3, %c0_27, %c0_28] : memref<5x64x64xbf16, #tpu.memory_space<vmem>>, vector<1x64x64xbf16>
    %36 = vector.shape_cast %35 : vector<1x64x64xbf16> to vector<64x64xbf16>
    %cst_29 = arith.constant dense<0.000000e+00> : vector<32x64xf32>
    %37 = tpu.matmul %34, %36, %cst_29 {dimension_numbers = #tpu.dot_dimension_numbers<[1], [0], [0], [1], [0, 0, 1, 1], [], []>} : vector<32x64xbf16>, vector<64x64xbf16>, vector<32x64xf32> -> vector<32x64xf32>
    %38 = arith.truncf %37 : vector<32x64xf32> to vector<32x64xbf16>
    %cst_30 = arith.constant dense<0.000000e+00> : vector<32x64xf32>
    %39 = tpu.matmul %0, %38, %cst_30 {dimension_numbers = #tpu.dot_dimension_numbers<[1], [0], [0], [1], [0, 0, 1, 1], [], []>} : vector<32x32xbf16>, vector<32x64xbf16>, vector<32x64xf32> -> vector<32x64xf32>
    %c3_31 = arith.constant 3 : index
    %c0_32 = arith.constant 0 : index
    %c0_33 = arith.constant 0 : index
    %40 = vector.load %arg3[%c3_31, %c0_32, %c0_33] : memref<5x32x64xf32, #tpu.memory_space<vmem>>, vector<1x32x64xf32>
    %41 = vector.shape_cast %40 : vector<1x32x64xf32> to vector<32x64xf32>
    %42 = arith.addf %39, %41 : vector<32x64xf32>
    %cst_34 = arith.constant 0.000000e+00 : f32
    %43 = vector.broadcast %cst_34 : f32 to vector<32x64xf32>
    %44 = arith.maximumf %42, %43 : vector<32x64xf32>
    %45 = arith.truncf %44 : vector<32x64xf32> to vector<32x64xbf16>
    %c4 = arith.constant 4 : index
    %c0_35 = arith.constant 0 : index
    %c0_36 = arith.constant 0 : index
    %46 = vector.load %arg2[%c4, %c0_35, %c0_36] : memref<5x64x64xbf16, #tpu.memory_space<vmem>>, vector<1x64x64xbf16>
    %47 = vector.shape_cast %46 : vector<1x64x64xbf16> to vector<64x64xbf16>
    %cst_37 = arith.constant dense<0.000000e+00> : vector<32x64xf32>
    %48 = tpu.matmul %45, %47, %cst_37 {dimension_numbers = #tpu.dot_dimension_numbers<[1], [0], [0], [1], [0, 0, 1, 1], [], []>} : vector<32x64xbf16>, vector<64x64xbf16>, vector<32x64xf32> -> vector<32x64xf32>
    %49 = arith.truncf %48 : vector<32x64xf32> to vector<32x64xbf16>
    %cst_38 = arith.constant dense<0.000000e+00> : vector<32x64xf32>
    %50 = tpu.matmul %0, %49, %cst_38 {dimension_numbers = #tpu.dot_dimension_numbers<[1], [0], [0], [1], [0, 0, 1, 1], [], []>} : vector<32x32xbf16>, vector<32x64xbf16>, vector<32x64xf32> -> vector<32x64xf32>
    %c4_39 = arith.constant 4 : index
    %c0_40 = arith.constant 0 : index
    %c0_41 = arith.constant 0 : index
    %51 = vector.load %arg3[%c4_39, %c0_40, %c0_41] : memref<5x32x64xf32, #tpu.memory_space<vmem>>, vector<1x32x64xf32>
    %52 = vector.shape_cast %51 : vector<1x32x64xf32> to vector<32x64xf32>
    %53 = arith.addf %50, %52 : vector<32x64xf32>
    %54 = vector.extract_strided_slice %53 {offsets = [0, 0], sizes = [32, 32], strides = [1, 1]} : vector<32x64xf32> to vector<32x32xf32>
    %55 = vector.extract_strided_slice %44 {offsets = [0, 32], sizes = [32, 32], strides = [1, 1]} : vector<32x64xf32> to vector<32x32xf32>
    %56 = arith.addf %54, %55 : vector<32x32xf32>
    %c0_42 = arith.constant 0 : index
    %c0_43 = arith.constant 0 : index
    %57 = vector.load %arg0[%c0_42, %c0_43] : memref<32x64xbf16, #tpu.memory_space<vmem>>, vector<32x64xbf16>
    %58 = vector.extract_strided_slice %57 {offsets = [0, 0], sizes = [32, 32], strides = [1, 1]} : vector<32x64xbf16> to vector<32x32xbf16>
    %c0_44 = arith.constant 0 : index
    %c0_45 = arith.constant 0 : index
    %59 = vector.load %arg0[%c0_44, %c0_45] : memref<32x64xbf16, #tpu.memory_space<vmem>>, vector<32x64xbf16>
    %60 = vector.extract_strided_slice %59 {offsets = [0, 32], sizes = [32, 32], strides = [1, 1]} : vector<32x64xbf16> to vector<32x32xbf16>
    %61 = arith.addf %58, %60 : vector<32x32xbf16>
    %c0_46 = arith.constant 0 : index
    %c0_47 = arith.constant 0 : index
    %62 = vector.load %arg5[%c0_46, %c0_47] : memref<3x64xf32, #tpu.memory_space<vmem>>, vector<3x64xf32>
    %63 = vector.extract_strided_slice %62 {offsets = [0, 0], sizes = [1, 64], strides = [1, 1]} : vector<3x64xf32> to vector<1x64xf32>
    %64 = vector.extract_strided_slice %62 {offsets = [1, 0], sizes = [1, 64], strides = [1, 1]} : vector<3x64xf32> to vector<1x64xf32>
    %65 = vector.extract_strided_slice %62 {offsets = [2, 0], sizes = [1, 1], strides = [1, 1]} : vector<3x64xf32> to vector<1x1xf32>
    %66 = arith.truncf %56 : vector<32x32xf32> to vector<32x32xbf16>
    %c0_48 = arith.constant 0 : index
    %c0_49 = arith.constant 0 : index
    %67 = vector.load %arg4[%c0_48, %c0_49] : memref<64x64xbf16, #tpu.memory_space<vmem>>, vector<32x64xbf16>
    %cst_50 = arith.constant dense<0.000000e+00> : vector<32x64xf32>
    %68 = tpu.matmul %66, %67, %cst_50 {dimension_numbers = #tpu.dot_dimension_numbers<[1], [0], [0], [1], [0, 0, 1, 1], [], []>} : vector<32x32xbf16>, vector<32x64xbf16>, vector<32x64xf32> -> vector<32x64xf32>
    %c32 = arith.constant 32 : index
    %c0_51 = arith.constant 0 : index
    %69 = vector.load %arg4[%c32, %c0_51] : memref<64x64xbf16, #tpu.memory_space<vmem>>, vector<32x64xbf16>
    %cst_52 = arith.constant dense<0.000000e+00> : vector<32x64xf32>
    %70 = tpu.matmul %61, %69, %cst_52 {dimension_numbers = #tpu.dot_dimension_numbers<[1], [0], [0], [1], [0, 0, 1, 1], [], []>} : vector<32x32xbf16>, vector<32x64xbf16>, vector<32x64xf32> -> vector<32x64xf32>
    %71 = arith.addf %68, %70 : vector<32x64xf32>
    %72 = vector.broadcast %63 : vector<1x64xf32> to vector<32x64xf32>
    %73 = arith.addf %71, %72 : vector<32x64xf32>
    %74 = math.tanh %73 : vector<32x64xf32>
    %75 = vector.broadcast %64 : vector<1x64xf32> to vector<32x64xf32>
    %76 = arith.mulf %74, %75 : vector<32x64xf32>
    %cst_53 = arith.constant dense<0.000000e+00> : vector<32xf32>
    %77 = vector.multi_reduction <add>, %76, %cst_53 [1] : vector<32x64xf32> to vector<32xf32>
    %78 = vector.shape_cast %77 : vector<32xf32> to vector<32x1xf32>
    %79 = vector.broadcast %65 : vector<1x1xf32> to vector<32x1xf32>
    %80 = arith.addf %78, %79 : vector<32x1xf32>
    %81 = vector.extract_strided_slice %80 {offsets = [0, 0], sizes = [16, 1], strides = [1, 1]} : vector<32x1xf32> to vector<16x1xf32>
    %82 = vector.extract_strided_slice %80 {offsets = [16, 0], sizes = [16, 1], strides = [1, 1]} : vector<32x1xf32> to vector<16x1xf32>
    %83 = arith.maximumf %81, %82 : vector<16x1xf32>
    %84 = arith.subf %81, %83 : vector<16x1xf32>
    %85 = math.exp %84 : vector<16x1xf32>
    %86 = arith.subf %82, %83 : vector<16x1xf32>
    %87 = math.exp %86 : vector<16x1xf32>
    %88 = arith.addf %85, %87 : vector<16x1xf32>
    %89 = tpu.reciprocal %88 {approx = true} : vector<16x1xf32> -> vector<16x1xf32>
    %90 = arith.mulf %85, %89 : vector<16x1xf32>
    %91 = arith.mulf %87, %89 : vector<16x1xf32>
    %92 = vector.extract_strided_slice %56 {offsets = [0, 0], sizes = [16, 32], strides = [1, 1]} : vector<32x32xf32> to vector<16x32xf32>
    %93 = vector.extract_strided_slice %56 {offsets = [16, 0], sizes = [16, 32], strides = [1, 1]} : vector<32x32xf32> to vector<16x32xf32>
    %94 = vector.broadcast %90 : vector<16x1xf32> to vector<16x32xf32>
    %95 = arith.mulf %94, %92 : vector<16x32xf32>
    %96 = vector.broadcast %91 : vector<16x1xf32> to vector<16x32xf32>
    %97 = arith.mulf %96, %93 : vector<16x32xf32>
    %98 = arith.addf %95, %97 : vector<16x32xf32>
    %99 = tpu.iota {dimensions = array<i32: 1>} : vector<16x32xi32>
    %c0_i32 = arith.constant 0 : i32
    %100 = vector.broadcast %c0_i32 : i32 to vector<16x32xi32>
    %101 = arith.cmpi eq, %99, %100 : vector<16x32xi32>
    %c1_i32 = arith.constant 1 : i32
    %102 = vector.broadcast %c1_i32 : i32 to vector<16x32xi32>
    %103 = arith.cmpi eq, %99, %102 : vector<16x32xi32>
    %cst_54 = arith.constant 0.000000e+00 : f32
    %104 = vector.shape_cast %91 : vector<16x1xf32> to vector<16x1xf32>
    %105 = vector.broadcast %104 : vector<16x1xf32> to vector<16x32xf32>
    %106 = vector.broadcast %cst_54 : f32 to vector<16x32xf32>
    %107 = arith.select %103, %105, %106 : vector<16x32xi1>, vector<16x32xf32>
    %108 = vector.shape_cast %90 : vector<16x1xf32> to vector<16x1xf32>
    %109 = vector.broadcast %108 : vector<16x1xf32> to vector<16x32xf32>
    %110 = arith.select %101, %109, %107 : vector<16x32xi1>, vector<16x32xf32>
    %111 = tpu.concatenate %98, %92, %93, %110 in 1 : vector<16x32xf32>, vector<16x32xf32>, vector<16x32xf32>, vector<16x32xf32> -> vector<16x128xf32>
    %c0_55 = arith.constant 0 : index
    %c0_56 = arith.constant 0 : index
    %112 = vector.load %arg6[%c0_55, %c0_56] : memref<16x128xf32, #tpu.memory_space<vmem>>, vector<16x128xf32>
    tpu.vector_store %arg6[%c0_55, %c0_56], %111 {strides = array<i32>} : memref<16x128xf32, #tpu.memory_space<vmem>>, vector<16x128xf32>,
    return
  }
}

</mosaic_0001>

<bundles_post_ra>
// kernel: encoder_atten_5layer.1
= control target key start
LH: loop header
LB: loop body
LE: loop exit
PB: predicated region body
PF: predicated region fallthrough
CT: control target
= control target key end

     0   :  { %vm74_vm0 = vcmask 523264   ;;  %vm146_vm1 = vcmask 261120   ;;  %s1460_s13 = smov 96   ;;  %s1463_s19 = smov 64   ;;  %vm1117_vm4 = vcmask 785408   ;;  %s1756_s2 = inlined_call_operand.vmem [shape: bf16[5,64,64], index: 2, kind: input, shape index: {}]   ;;  %s1757_s0 = inlined_call_operand.vmem [shape: bf16[32,64], index: 0, kind: input, shape index: {}]   ;;  %s1758_s1 = inlined_call_operand.vmem [shape: bf16[32,32], index: 1, kind: input, shape index: {}]   ;;  %s1759_s3 = inlined_call_operand.vmem [shape: f32[5,32,64], index: 3, kind: input, shape index: {}]   ;;  %s1760_s4 = inlined_call_operand.vmem [shape: bf16[64,64], index: 4, kind: input, shape index: {}]   ;;  %s1761_s5 = inlined_call_operand.vmem [shape: f32[3,64], index: 5, kind: input, shape index: {}]   ;;  %s1762_s6 = inlined_call_operand.vmem [shape: f32[16,128], index: 6, kind: output, shape index: {}]  }
   0x1   :  { %v1412_v0 = vld [vmem:[%s1756_s2] sm:$0xff]   ;;  %v1413_v1 = vld [vmem:[%s1756_s2 + $0x8] sm:$0xff]   ;;  %v1414_v2 = vld [vmem:[%s1756_s2 + $0x10] sm:$0xff]  }
   0x2   :  { %1286 = vmatprep.subr.bf16.mxu0 %v1412_v0  ;;  %v1511_v3 = vld [vmem:[%s1757_s0] sm:$0xf]  ;;  %v1516_v4 = vld [vmem:[%s1757_s0 + $0x4] sm:$0xf]  ;;  %v1415_v6 = vld [vmem:[%s1756_s2 + $0x18] sm:$0xff]  }
   0x3   :  { %1287 = vmatpush3.bf16.msra.mxu0 %v1412_v0  ;;  %v1126_v5 = vcombine.low %v1511_v3, %v1516_v4  ;;  %v1527_v7 = vld [vmem:[%s1757_s0 + $0x8] sm:$0xf]  ;;  %v1532_v8 = vld [vmem:[%s1757_s0 + $0xc] sm:$0xf]  ;;  %v1540_v10 = vld [vmem:[%s1758_s1] sm:$0xff]   ;;  %822 = vrot.lane.b32.xlu0 %v1511_v3, %s1460_s13 }
   0x4   :  { %1288 = vmatprep.subr.bf16.mxu0 %v1413_v1  ;;  %v1127_v9 = vcombine.low %v1527_v7, %v1532_v8  ;;  %1302 = vmatprep.mubr.msk.bf16.mxu1 %vm146_vm1, %v1540_v10  ;;  %v1420_v17 = vld [vmem:[%s1756_s2 + $0x20] sm:$0xff]   ;;  %v1552_v18 = vld [vmem:[%s1758_s1 + $0x8] sm:$0xff]   ;;  %v1422_v20 = vld [vmem:[%s1756_s2 + $0x30] sm:$0xff]  }
   0x5   :  { %1294 = vmatprep.mubr.msk.bf16.mxu0 %vm74_vm0, %v1126_v5  ;;  %v1421_v19 = vld [vmem:[%s1756_s2 + $0x28] sm:$0xff]   ;;  %v1423_v21 = vld [vmem:[%s1756_s2 + $0x38] sm:$0xff]   ;;  %v134_v22 = vld [vmem:[%s1759_s3 + $0x10] sm:$0xff]  ;;  %826 = vrot.lane.b32.xlu1 %v1527_v7, %s1460_s13 }
   0x6   :  { %v132_v23 = vld [vmem:[%s1759_s3] sm:$0xff]  ;;  %v135_v25 = vld [vmem:[%s1759_s3 + $0x18] sm:$0xff]  ;;  %v133_v28 = vld [vmem:[%s1759_s3 + $0x8] sm:$0xff] }
   0x7   :  { %1289 = vmatpush3.bf16.msra.mxu0 %v1413_v1  ;;  %v1424_v46 = vld [vmem:[%s1756_s2 + $0x40] sm:$0xff]   ;;  %v1425_v47 = vld [vmem:[%s1756_s2 + $0x48] sm:$0xff]   ;;  %v1426_v48 = vld [vmem:[%s1756_s2 + $0x50] sm:$0xff]   ;;  %824 = vrot.lane.b32.xlu0 %v1516_v4, %s1460_s13 }
   0x8   :  { %1290 = vmatprep.subr.bf16.mxu0 %v1414_v2  ;;  %v1427_v49 = vld [vmem:[%s1756_s2 + $0x58] sm:$0xff]   ;;  %v1154_v50 = vld [vmem:[%s1759_s3 + $0x30] sm:$0xff]  ;;  %v1152_v51 = vld [vmem:[%s1759_s3 + $0x20] sm:$0xff] }
   0x9   :  { %v1155_v53 = vld [vmem:[%s1759_s3 + $0x38] sm:$0xff]  ;;  %v1153_v56 = vld [vmem:[%s1759_s3 + $0x28] sm:$0xff]  ;;  %828 = vrot.lane.b32.xlu1 %v1532_v8, %s1460_s13 }
   0xb   :  { %1291 = vmatpush3.bf16.msra.mxu0 %v1414_v2 }
   0xc   :  { %1292 = vmatprep.subr.bf16.mxu0 %v1415_v6 }
   0xf   :  { %1293 = vmatpush3.bf16.msra.mxu0 %v1415_v6 }
  0x12   :  { %1295 = vmatmul.mubr.msk.bf16.vlgmr.msra.gmra.mrb[0].mxu0 %vm74_vm0, %v1127_v9 }
  0x13   :  { %1322 = vmatprep.mubr.msk.bf16.mxu0 %vm146_vm1, %v1540_v10 }
  0xe5   :  { %v1296_v11 = vpop.f32.mrb[0].mxu0 }
  0xe6   :  { %v115_v12 = vpop.f32.mrb[1].mxu0 }
  0xe7   :  { %v1297_v13 = vpop.f32.mrb[2].mxu0 }
  0xe8   :  { %v131_v14 = vpack.c.bf16 %v1297_v13, %v1296_v11  ;;  %v118_v15 = vpop.f32.mrb[3].mxu0 }
  0xe9   :  { %v130_v16 = vpack.c.bf16 %v118_v15, %v115_v12  ;;  %v1428_v15 = vld [vmem:[%s1756_s2 + $0x60] sm:$0xff]  }
  0xeb   :  { %1298 = vmatprep.subr.bf16.mxu1 %v130_v16 }
  0xec   :  { %1299 = vmatpush3.bf16.msra.mxu1 %v130_v16  ;;  %v1429_v16 = vld [vmem:[%s1756_s2 + $0x68] sm:$0xff]  }
  0xed   :  { %1300 = vmatprep.subr.bf16.mxu1 %v131_v14 }
  0xf0   :  { %1301 = vmatpush3.bf16.msra.mxu1 %v131_v14 }
  0xf1   :  { %1306 = vmatprep.subr.bf16.mxu1 %v1420_v17 }
  0xf3   :  { %1303 = vmatmul.mubr.msk.bf16.vlgmr.msra.gmra.mrb[0].mxu1 %vm146_vm1, %v1552_v18 }
  0xf4   :  { %1307 = vmatpush3.bf16.msra.mxu1 %v1420_v17  ;;  %v1430_v17 = vld [vmem:[%s1756_s2 + $0x70] sm:$0xff]  }
  0xf5   :  { %1308 = vmatprep.subr.bf16.mxu1 %v1421_v19 }
  0xf8   :  { %1309 = vmatpush3.bf16.msra.mxu1 %v1421_v19  ;;  %v1431_v19 = vld [vmem:[%s1756_s2 + $0x78] sm:$0xff]  }
  0xf9   :  { %1310 = vmatprep.subr.bf16.mxu1 %v1422_v20 }
  0xfc   :  { %1311 = vmatpush3.bf16.msra.mxu1 %v1422_v20  ;;  %v1174_v20 = vld [vmem:[%s1759_s3 + $0x50] sm:$0xff] }
  0xfd   :  { %1312 = vmatprep.subr.bf16.mxu1 %v1423_v21 }
 0x100   :  { %1313 = vmatpush3.bf16.msra.mxu1 %v1423_v21  ;;  %v1172_v21 = vld [vmem:[%s1759_s3 + $0x40] sm:$0xff] }
 0x1c6   :  { %v1304_v24 = vpop.f32.mrb[0].mxu1 }
 0x1c7   :  { %v196_v26 = vadd.f32 %v1304_v24, %v134_v22  ;;  %v187_v27 = vpop.f32.mrb[1].mxu1 }
 0x1c8   :  { %v188_v29 = vadd.f32 %v187_v27, %v132_v23  ;;  %v1305_v30 = vpop.f32.mrb[2].mxu1  ;;  %v1175_v23 = vld [vmem:[%s1759_s3 + $0x58] sm:$0xff] }
 0x1c9   :  { %v199_v31 = vadd.f32 %v1305_v30, %v135_v25  ;;  %v190_v32 = vpop.f32.mrb[3].mxu1  ;;  %v204_v34 = vmax.f32 %v196_v26, 0.0  ;;  %v1173_v26 = vld [vmem:[%s1759_s3 + $0x48] sm:$0xff] }
 0x1ca   :  { %v191_v33 = vadd.f32 %v190_v32, %v133_v28  ;;  %v202_v36 = vmax.f32 %v188_v29, 0.0 }
 0x1cb   :  { %v205_v35 = vmax.f32 %v199_v31, 0.0 }
 0x1cc   :  { %v203_v37 = vmax.f32 %v191_v33, 0.0 }
 0x1cd   :  { %v207_v38 = vpack.c.bf16 %v205_v35, %v204_v34 }
 0x1ce   :  { %v206_v39 = vpack.c.bf16 %v203_v37, %v202_v36 }
 0x1d0   :  { %1314 = vmatprep.mubr.msk.bf16.mxu1 %vm74_vm0, %v206_v39 }
 0x1d1   :  { %1315 = vmatmul.mubr.msk.bf16.vlgmr.msra.gmra.mrb[4].mxu1 %vm74_vm0, %v207_v38 }
 0x1d2   :  { %1342 = vmatprep.mubr.msk.bf16.mxu1 %vm146_vm1, %v1540_v10 }
 0x2a4   :  { %v1316_v40 = vpop.f32.mrb[4].mxu1 }
 0x2a5   :  { %v281_v41 = vpop.f32.mrb[5].mxu1 }
 0x2a6   :  { %v1317_v42 = vpop.f32.mrb[6].mxu1 }
 0x2a7   :  { %v297_v43 = vpack.c.bf16 %v1317_v42, %v1316_v40  ;;  %v284_v44 = vpop.f32.mrb[7].mxu1 }
 0x2a8   :  { %v296_v45 = vpack.c.bf16 %v284_v44, %v281_v41  ;;  %v1433_v44 = vld [vmem:[%s1756_s2 + $0x88] sm:$0xff]  }
 0x2aa   :  { %1318 = vmatprep.subr.bf16.mxu0 %v296_v45 }
 0x2ab   :  { %1319 = vmatpush3.bf16.msra.mxu0 %v296_v45  ;;  %v1434_v45 = vld [vmem:[%s1756_s2 + $0x90] sm:$0xff]  }
 0x2ac   :  { %1320 = vmatprep.subr.bf16.mxu0 %v297_v43 }
 0x2af   :  { %1321 = vmatpush3.bf16.msra.mxu0 %v297_v43 }
 0x2b0   :  { %1326 = vmatprep.subr.bf16.mxu0 %v1424_v46 }
 0x2b2   :  { %1323 = vmatmul.mubr.msk.bf16.vlgmr.msra.gmra.mrb[4].mxu0 %vm146_vm1, %v1552_v18 }
 0x2b3   :  { %1327 = vmatpush3.bf16.msra.mxu0 %v1424_v46  ;;  %v1435_v46 = vld [vmem:[%s1756_s2 + $0x98] sm:$0xff]  }
 0x2b4   :  { %1328 = vmatprep.subr.bf16.mxu0 %v1425_v47 }
 0x2b7   :  { %1329 = vmatpush3.bf16.msra.mxu0 %v1425_v47  ;;  %v1194_v47 = vld [vmem:[%s1759_s3 + $0x70] sm:$0xff] }
 0x2b8   :  { %1330 = vmatprep.subr.bf16.mxu0 %v1426_v48 }
 0x2bb   :  { %1331 = vmatpush3.bf16.msra.mxu0 %v1426_v48  ;;  %v1192_v48 = vld [vmem:[%s1759_s3 + $0x60] sm:$0xff] }
 0x2bc   :  { %1332 = vmatprep.subr.bf16.mxu0 %v1427_v49 }
 0x2bf   :  { %1333 = vmatpush3.bf16.msra.mxu0 %v1427_v49 }
 0x385   :  { %v1324_v52 = vpop.f32.mrb[4].mxu0 }
 0x386   :  { %v346_v54 = vadd.f32 %v1324_v52, %v1154_v50  ;;  %v337_v55 = vpop.f32.mrb[5].mxu0  ;;  %v1195_v50 = vld [vmem:[%s1759_s3 + $0x78] sm:$0xff] }
 0x387   :  { %v338_v57 = vadd.f32 %v1152_v51, %v337_v55  ;;  %v1325_v58 = vpop.f32.mrb[6].mxu0 }
 0x388   :  { %v349_v59 = vadd.f32 %v1325_v58, %v1155_v53  ;;  %v340_v60 = vpop.f32.mrb[7].mxu0  ;;  %v354_v62 = vmax.f32 %v346_v54, 0.0  ;;  %v1193_v53 = vld [vmem:[%s1759_s3 + $0x68] sm:$0xff] }
 0x389   :  { %v341_v61 = vadd.f32 %v1153_v56, %v340_v60  ;;  %v352_v0 = vmax.f32 %v338_v57, 0.0 }
 0x38a   :  { %v355_v63 = vmax.f32 %v349_v59, 0.0 }
 0x38b   :  { %v353_v1 = vmax.f32 %v341_v61, 0.0 }
 0x38c   :  { %v357_v2 = vpack.c.bf16 %v355_v63, %v354_v62 }
 0x38d   :  { %v356_v5 = vpack.c.bf16 %v353_v1, %v352_v0  ;;  %v823_v1 = vpop.permute.xlu0 %822 }
 0x38f   :  { %1334 = vmatprep.mubr.msk.bf16.mxu0 %vm74_vm0, %v356_v5 }
 0x390   :  { %1335 = vmatmul.mubr.msk.bf16.vlgmr.msra.gmra.mrb[8].mxu0 %vm74_vm0, %v357_v2 }
 0x391   :  { %1362 = vmatprep.mubr.msk.bf16.mxu0 %vm146_vm1, %v1540_v10 }
 0x463   :  { %v1336_v6 = vpop.f32.mrb[8].mxu0 }
 0x464   :  { %v431_v9 = vpop.f32.mrb[9].mxu0 }
 0x465   :  { %v1337_v11 = vpop.f32.mrb[10].mxu0 }
 0x466   :  { %v447_v12 = vpack.c.bf16 %v1337_v11, %v1336_v6  ;;  %v434_v13 = vpop.f32.mrb[11].mxu0 }
 0x467   :  { %v446_v14 = vpack.c.bf16 %v434_v13, %v431_v9  ;;  %v825_v13 = vpop.permute.xlu0 %824 }
 0x469   :  { %1338 = vmatprep.subr.bf16.mxu1 %v446_v14 }
 0x46a   :  { %1339 = vmatpush3.bf16.msra.mxu1 %v446_v14  ;;  %v834_v14 = vadd.bf16 %v823_v1, %v1511_v3 }
 0x46b   :  { %1340 = vmatprep.subr.bf16.mxu1 %v447_v12 }
 0x46e   :  { %1341 = vmatpush3.bf16.msra.mxu1 %v447_v12 }
 0x46f   :  { %1346 = vmatprep.subr.bf16.mxu1 %v1428_v15 }
 0x471   :  { %1343 = vmatmul.mubr.msk.bf16.vlgmr.msra.gmra.mrb[8].mxu1 %vm146_vm1, %v1552_v18 }
 0x472   :  { %1347 = vmatpush3.bf16.msra.mxu1 %v1428_v15  ;;  %v827_v15 = vpop.permute.xlu1 %826 }
 0x473   :  { %1348 = vmatprep.subr.bf16.mxu1 %v1429_v16 }
 0x476   :  { %1349 = vmatpush3.bf16.msra.mxu1 %v1429_v16  ;;  %v835_v16 = vadd.bf16 %v825_v13, %v1516_v4  ;;  %v1438_v4 = vld [vmem:[%s1760_s4] sm:$0xff]   ;;  %v1461_v13 = vmov 0  }
 0x477   :  { %1350 = vmatprep.subr.bf16.mxu1 %v1430_v17  ;;  %1410 = vset.pattern.permute.xlu1 %v1461_v13 }
 0x478   :  { %1411 = vset.pattern.permute.xlu0 %v1461_v13 }
 0x47a   :  { %1351 = vmatpush3.bf16.msra.mxu1 %v1430_v17  ;;  %v1436_v17 = vld [vmem:[%s1760_s4 + $0x10] sm:$0xff]  }
 0x47b   :  { %1352 = vmatprep.subr.bf16.mxu1 %v1431_v19 }
 0x47e   :  { %1353 = vmatpush3.bf16.msra.mxu1 %v1431_v19  ;;  %v1218_v19 = vcombine.low %v834_v14, %v835_v16 }
 0x544   :  { %v1344_v22 = vpop.f32.mrb[8].mxu1 }
 0x545   :  { %v496_v24 = vadd.f32 %v1344_v22, %v1174_v20  ;;  %v487_v25 = vpop.f32.mrb[9].mxu1  ;;  %v1437_v20 = vld [vmem:[%s1760_s4 + $0x18] sm:$0xff]   ;;  %v836_v22 = vadd.bf16 %v827_v15, %v1527_v7  ;;  %v1439_v7 = vld [vmem:[%s1760_s4 + $0x8] sm:$0xff]  }
 0x546   :  { %v488_v27 = vadd.f32 %v1172_v21, %v487_v25  ;;  %v1345_v28 = vpop.f32.mrb[10].mxu1  ;;  %v829_v21 = vpop.permute.xlu1 %828  ;;  %v1214_v25 = vld [vmem:[%s1759_s3 + $0x90] sm:$0xff] }
 0x547   :  { %v499_v29 = vadd.f32 %v1345_v28, %v1175_v23  ;;  %v490_v30 = vpop.f32.mrb[11].mxu1  ;;  %v504_v32 = vmax.f32 %v496_v24, 0.0  ;;  %v837_v3 = vadd.bf16 %v829_v21, %v1532_v8 }
 0x548   :  { %v491_v31 = vadd.f32 %v1173_v26, %v490_v30  ;;  %v502_v34 = vmax.f32 %v488_v27, 0.0  ;;  %v1215_v27 = vld [vmem:[%s1759_s3 + $0x98] sm:$0xff] }
 0x549   :  { %v505_v33 = vmax.f32 %v499_v29, 0.0  ;;  %v1219_v23 = vcombine.low %v836_v22, %v837_v3  ;;  %v1213_v29 = vld [vmem:[%s1759_s3 + $0x88] sm:$0xff] }
 0x54a   :  { %v503_v35 = vmax.f32 %v491_v31, 0.0 }
 0x54b   :  { %v507_v36 = vpack.c.bf16 %v505_v33, %v504_v32 }
 0x54c   :  { %v506_v37 = vpack.c.bf16 %v503_v35, %v502_v34 }
 0x54e   :  { %1354 = vmatprep.mubr.msk.bf16.mxu1 %vm74_vm0, %v506_v37 }
 0x54f   :  { %1355 = vmatmul.mubr.msk.bf16.vlgmr.msra.gmra.mrb[12].mxu1 %vm74_vm0, %v507_v36 }
 0x550   :  { %1382 = vmatprep.mubr.msk.bf16.mxu1 %vm146_vm1, %v1540_v10  ;;  %v1432_v10 = vld [vmem:[%s1756_s2 + $0x80] sm:$0xff]  }
 0x622   :  { %v1356_v38 = vpop.f32.mrb[12].mxu1 }
 0x623   :  { %v581_v39 = vpop.f32.mrb[13].mxu1 }
 0x624   :  { %v1357_v40 = vpop.f32.mrb[14].mxu1 }
 0x625   :  { %v597_v41 = vpack.c.bf16 %v1357_v40, %v1356_v38  ;;  %v584_v42 = vpop.f32.mrb[15].mxu1 }
 0x626   :  { %v596_v43 = vpack.c.bf16 %v584_v42, %v581_v39 }
 0x628   :  { %1358 = vmatprep.subr.bf16.mxu0 %v596_v43 }
 0x629   :  { %1359 = vmatpush3.bf16.msra.mxu0 %v596_v43 }
 0x62a   :  { %1360 = vmatprep.subr.bf16.mxu0 %v597_v41 }
 0x62d   :  { %1361 = vmatpush3.bf16.msra.mxu0 %v597_v41 }
 0x62e   :  { %1366 = vmatprep.subr.bf16.mxu0 %v1432_v10 }
 0x630   :  { %1363 = vmatmul.mubr.msk.bf16.vlgmr.msra.gmra.mrb[12].mxu0 %vm146_vm1, %v1552_v18 }
 0x631   :  { %1367 = vmatpush3.bf16.msra.mxu0 %v1432_v10  ;;  %v993_v10 = vlaneseq }
 0x632   :  { %1368 = vmatprep.subr.bf16.mxu0 %v1433_v44 }
 0x635   :  { %1369 = vmatpush3.bf16.msra.mxu0 %v1433_v44  ;;  %v994_v44 = vshrl.u32 %v993_v10, 7 }
 0x636   :  { %1370 = vmatprep.subr.bf16.mxu0 %v1434_v45 }
 0x639   :  { %1371 = vmatpush3.bf16.msra.mxu0 %v1434_v45  ;;  %v1027_v45 = vsub.s32 2, %v994_v44 }
 0x63a   :  { %1372 = vmatprep.subr.bf16.mxu0 %v1435_v46 }
 0x63d   :  { %1373 = vmatpush3.bf16.msra.mxu0 %v1435_v46  ;;  %v838_v46 = vld [vmem:[%s1761_s5] sm:$0x7]  ;;  %s1462_s5 = smov 32  }
 0x703   :  { %v1364_v49 = vpop.f32.mrb[12].mxu0 }
 0x704   :  { %v646_v51 = vadd.f32 %v1364_v49, %v1194_v47  ;;  %v637_v52 = vpop.f32.mrb[13].mxu0  ;;  %v1028_v47 = vrot.slane %v838_v46, %v1027_v45 }
 0x705   :  { %v638_v54 = vadd.f32 %v1192_v48, %v637_v52  ;;  %v1365_v55 = vpop.f32.mrb[14].mxu0  ;;  %v995_v48 = vsub.s32 0, %v994_v44 }
 0x706   :  { %v649_v56 = vadd.f32 %v1365_v55, %v1195_v50  ;;  %v640_v57 = vpop.f32.mrb[15].mxu0  ;;  %v654_v60 = vmax.f32 %v646_v51, 0.0 }
 0x707   :  { %v652_v58 = vmax.f32 %v638_v54, 0.0  ;;  %v641_v59 = vadd.f32 %v1193_v53, %v640_v57  ;;  %v996_v49 = vrot.slane %v838_v46, %v995_v48 }
 0x708   :  { %v655_v61 = vmax.f32 %v649_v56, 0.0 }
 0x709   :  { %v653_v62 = vmax.f32 %v641_v59, 0.0  ;;  %806 = vrot.lane.b32.xlu0 %v652_v58, %s1460_s13 }
 0x70a   :  { %v657_v63 = vpack.c.bf16 %v655_v61, %v654_v60 }
 0x70b   :  { %v656_v0 = vpack.c.bf16 %v653_v62, %v652_v58  ;;  %808 = vrot.lane.b32.xlu1 %v653_v62, %s1460_s13  ;;  %v1007_v58 = vsub.s32 1, %v994_v44  ;;  %v1082_v44 = vand.u32 127, %v993_v10 }
 0x70d   :  { %810 = vrot.lane.b32.xlu0 %v654_v60, %s1460_s13  ;;  %1374 = vmatprep.mubr.msk.bf16.mxu0 %vm74_vm0, %v656_v0  ;;  %v1008_v59 = vrot.slane %v838_v46, %v1007_v58  ;;  %vm1084_vm2 = vcmp.eq.s32.totalorder %v1082_v44, 1  ;;  %vm1083_vm3 = vcmp.eq.s32.totalorder %v1082_v44, 0 }
 0x70e   :  { %1375 = vmatmul.mubr.msk.bf16.vlgmr.msra.gmra.mrb[16].mxu0 %vm74_vm0, %v657_v63 }
 0x70f   :  { %812 = vrot.lane.b32.xlu1 %v655_v61, %s1460_s13 }
 0x77b   :  { %v807_v24 = vpop.permute.xlu0 %806 }
 0x77d   :  { %v809_v8 = vpop.permute.xlu1 %808 }
 0x77f   :  { %v811_v38 = vpop.permute.xlu0 %810 }
 0x781   :  { %v813_v35 = vpop.permute.xlu1 %812 }
 0x7e1   :  { %v1376_v2 = vpop.f32.mrb[16].mxu0 }
 0x7e2   :  { %v731_v5 = vpop.f32.mrb[17].mxu0 }
 0x7e3   :  { %v1377_v6 = vpop.f32.mrb[18].mxu0 }
 0x7e4   :  { %v747_v9 = vpack.c.bf16 %v1377_v6, %v1376_v2  ;;  %v734_v11 = vpop.f32.mrb[19].mxu0 }
 0x7e5   :  { %v746_v12 = vpack.c.bf16 %v734_v11, %v731_v5 }
 0x7e7   :  { %1378 = vmatprep.subr.bf16.mxu1 %v746_v12 }
 0x7e8   :  { %1379 = vmatpush3.bf16.msra.mxu1 %v746_v12 }
 0x7e9   :  { %1380 = vmatprep.subr.bf16.mxu1 %v747_v9 }
 0x7ec   :  { %1381 = vmatpush3.bf16.msra.mxu1 %v747_v9 }
 0x7ed   :  { %1386 = vmatprep.subr.bf16.mxu1 %v1436_v17 }
 0x7ef   :  { %1383 = vmatmul.mubr.msk.bf16.vlgmr.msra.gmra.mrb[16].mxu1 %vm146_vm1, %v1552_v18  ;;  %v1212_v18 = vld [vmem:[%s1759_s3 + $0x80] sm:$0xff] }
 0x7f0   :  { %1387 = vmatpush3.bf16.msra.mxu1 %v1436_v17  ;;  %1390 = vmatprep.mubr.msk.bf16.mxu1 %vm146_vm1, %v1218_v19 }
 0x7f1   :  { %1388 = vmatprep.subr.bf16.mxu1 %v1437_v20 }
 0x7f4   :  { %1389 = vmatpush3.bf16.msra.mxu1 %v1437_v20 }
 0x7f5   :  { %1394 = vmatprep.subr.bf16.mxu1 %v1438_v4 }
 0x7f7   :  { %1391 = vmatmul.mubr.msk.bf16.vlgmr.msra.gmra.mrb[20].mxu1 %vm146_vm1, %v1219_v23 }
 0x7f8   :  { %1395 = vmatpush3.bf16.msra.mxu1 %v1438_v4 }
 0x7f9   :  { %1396 = vmatprep.subr.bf16.mxu1 %v1439_v7 }
 0x7fc   :  { %1397 = vmatpush3.bf16.msra.mxu1 %v1439_v7 }
 0x8c2   :  { %v1384_v26 = vpop.f32.mrb[16].mxu1 }
 0x8c3   :  { %v787_v28 = vpop.f32.mrb[17].mxu1  ;;  %v796_v32 = vadd.f32 %v1384_v26, %v1214_v25 }
 0x8c4   :  { %v788_v30 = vadd.f32 %v1212_v18, %v787_v28  ;;  %v1385_v31 = vpop.f32.mrb[18].mxu1 }
 0x8c5   :  { %v799_v33 = vadd.f32 %v1385_v31, %v1215_v27  ;;  %v790_v34 = vpop.f32.mrb[19].mxu1  ;;  %v1719_v41 = vadd.f32 %v811_v38, %v796_v32 }
 0x8c6   :  { %v791_v36 = vadd.f32 %v1213_v29, %v790_v34  ;;  %v1715_v39 = vadd.f32 %v807_v24, %v788_v30 }
 0x8c7   :  { %v1713_v37 = vadd.f32 %v813_v35, %v799_v33 }
 0x8c8   :  { %v1717_v40 = vadd.f32 %v809_v8, %v791_v36 }
 0x8c9   :  { %v840_v43 = vpack.c.bf16 %v1713_v37, %v1719_v41 }
 0x8ca   :  { %v839_v42 = vpack.c.bf16 %v1717_v40, %v1715_v39 }
 0x8cc   :  { %1398 = vmatprep.mubr.msk.bf16.mxu1 %vm146_vm1, %v839_v42 }
 0x8cd   :  { %1399 = vmatmul.mubr.msk.bf16.vlgmr.msra.gmra.mrb[20].mxu1 %vm146_vm1, %v840_v43 }
 0x9a0   :  { %v1400_v50 = vpop.f32.mrb[20].mxu1 }
 0x9a1   :  { %v999_v51 = vadd.f32 %v1400_v50, %v996_v49  ;;  %v978_v52 = vpop.f32.mrb[21].mxu1 }
 0x9a2   :  { %v997_v53 = vadd.f32 %v996_v49, %v978_v52  ;;  %v1401_v54 = vpop.f32.mrb[22].mxu1 }
 0x9a3   :  { %1440 = vtanh.f32 %v999_v51  ;;  %v981_v55 = vpop.f32.mrb[23].mxu1  ;;  %v1000_v56 = vadd.f32 %v1401_v54, %v996_v49 }
 0x9a4   :  { %1442 = vtanh.f32 %v997_v53  ;;  %v998_v57 = vadd.f32 %v996_v49, %v981_v55 }
 0x9a6   :  { %1444 = vtanh.f32 %v998_v57 }
 0x9a7   :  { %1446 = vtanh.f32 %v1000_v56 }
 0x9ad   :  { %v1441_v60 = vpop.eup %1440 }
 0x9ae   :  { %v1443_v61 = vpop.eup %1442  ;;  %v1011_v2 = vmul.f32 %v1441_v60, %v1008_v59 }
 0x9af   :  { %v1009_v62 = vmul.f32 %v1443_v61, %v1008_v59 }
 0x9b0   :  { %v1445_v63 = vpop.eup %1444  ;;  %v1019_v9 = vsel %vm74_vm0, %v1011_v2, 0.0 }
 0x9b1   :  { %v1013_v0 = vsel %vm74_vm0, %v1009_v62, 0.0  ;;  %v1010_v1 = vmul.f32 %v1445_v63, %v1008_v59  ;;  %v1447_v5 = vpop.eup %1446 }
 0x9b2   :  { %1014 = vadd.xlane.f32.xlu0 %v1013_v0  ;;  %v1012_v11 = vmul.f32 %v1447_v5, %v1008_v59 }
 0x9b3   :  { %v1016_v6 = vsel %vm74_vm0, %v1010_v1, 0.0 }
 0x9b4   :  { %1017 = vadd.xlane.f32.xlu1 %v1016_v6  ;;  %v1022_v12 = vsel %vm74_vm0, %v1012_v11, 0.0 }
 0x9b6   :  { %1020 = vadd.xlane.f32.xlu0 %v1019_v9 }
 0x9ba   :  { %1023 = vadd.xlane.f32.xlu0 %v1022_v12 }
 0xa3f   :  { %v1015_v14 = vpop.xlane.xlu0 %1014 }
 0xa40   :  { %v1029_v16 = vadd.f32 %v1028_v47, %v1015_v14 }
 0xa41   :  { %v1018_v19 = vpop.xlane.xlu1 %1017 }
 0xa42   :  { %v1030_v22 = vadd.f32 %v1028_v47, %v1018_v19 }
 0xa43   :  { %v1021_v15 = vpop.xlane.xlu0 %1020 }
 0xa44   :  { %v1031_v17 = vadd.f32 %v1028_v47, %v1021_v15 }
 0xa46   :  { %v1033_v20 = vmax.f32 %v1029_v16, %v1031_v17 }
 0xa47   :  { %v1024_v21 = vpop.xlane.xlu0 %1023 }
 0xa48   :  { %v1035_v3 = vsub.f32 %v1029_v16, %v1033_v20  ;;  %v1041_v4 = vsub.f32 %v1031_v17, %v1033_v20  ;;  %v1032_v23 = vadd.f32 %v1028_v47, %v1024_v21 }
 0xa4a   :  { %v1037_v7 = vmul.f32 1.442695, %v1035_v3  ;;  %v1043_v8 = vmul.f32 1.442695, %v1041_v4  ;;  %v1034_v18 = vmax.f32 %v1030_v22, %v1032_v23 }
 0xa4c   :  { %1448 = vpow2.f32 %v1037_v7  ;;  %v1036_v24 = vsub.f32 %v1030_v22, %v1034_v18  ;;  %v1042_v25 = vsub.f32 %v1032_v23, %v1034_v18 }
 0xa4d   :  { %1450 = vpow2.f32 %v1043_v8 }
 0xa4e   :  { %v1039_v26 = vmul.f32 1.442695, %v1036_v24  ;;  %v1045_v27 = vmul.f32 1.442695, %v1042_v25 }
 0xa50   :  { %1452 = vpow2.f32 %v1039_v26 }
 0xa51   :  { %1454 = vpow2.f32 %v1045_v27 }
 0xa56   :  { %v1449_v28 = vpop.eup %1448 }
 0xa57   :  { %v1451_v29 = vpop.eup %1450 }
 0xa58   :  { %v1047_v30 = vadd.f32 %v1451_v29, %v1449_v28 }
 0xa5a   :  { %v1453_v31 = vpop.eup %1452  ;;  %1456 = vrcp.f32 %v1047_v30 }
 0xa5b   :  { %v1455_v32 = vpop.eup %1454 }
 0xa5c   :  { %v1048_v33 = vadd.f32 %v1455_v32, %v1453_v31 }
 0xa5e   :  { %1458 = vrcp.f32 %v1048_v33 }
 0xa64   :  { %v1457_v34 = vpop.eup %1456 }
 0xa65   :  { %v1053_v35 = vmul.f32 %v1457_v34, %v1451_v29  ;;  %v1051_v38 = vmul.f32 %v1457_v34, %v1449_v28 }
 0xa67   :  { %1069 = vperm.xlu1 %1410, %v1053_v35  }
 0xa68   :  { %v1459_v36 = vpop.eup %1458 }
 0xa69   :  { %v1054_v42 = vmul.f32 %v1459_v36, %v1455_v32  ;;  %v1052_v43 = vmul.f32 %v1459_v36, %v1453_v31 }
 0xa6b   :  { %1057 = vperm.xlu1 %1410, %v1051_v38   ;;  %1074 = vperm.xlu0 %1411, %v1054_v42  }
 0xa6f   :  { %1062 = vperm.xlu1 %1410, %v1052_v43  }
 0xa73   :  { %1091 = vrot.lane.b32.xlu1 %v1715_v39, %s1462_s5 }
 0xa77   :  { %1093 = vrot.lane.b32.xlu1 %v1717_v40, %s1462_s5 }
 0xa7b   :  { %1099 = vrot.lane.b32.xlu1 %v1719_v41, %s1463_s19 }
 0xa7f   :  { %1101 = vrot.lane.b32.xlu1 %v1713_v37, %s1463_s19 }
 0xae6   :  { %v1070_v45 = vpop.permute.xlu1 %1069 }
 0xae7   :  { %v1085_v46 = vsel %vm1084_vm2, %v1070_v45, 0.0  ;;  %v1077_v48 = vmul.f32 %v1070_v45, %v1719_v41 }
 0xaea   :  { %v1058_v47 = vpop.permute.xlu1 %1057  ;;  %v1075_v49 = vpop.permute.xlu0 %1074 }
 0xaeb   :  { %v1065_v50 = vmul.f32 %v1058_v47, %v1715_v39  ;;  %v1087_v51 = vsel %vm1083_vm3, %v1058_v47, %v1085_v46  ;;  %v1086_v53 = vsel %vm1084_vm2, %v1075_v49, 0.0  ;;  %v1078_v55 = vmul.f32 %v1075_v49, %v1713_v37 }
 0xaec   :  { %1107 = vrot.lane.b32.xlu1 %v1087_v51, %s1460_s13 }
 0xaed   :  { %v1079_v52 = vadd.f32 %v1077_v48, %v1065_v50 }
 0xaee   :  { %v1063_v54 = vpop.permute.xlu1 %1062 }
 0xaef   :  { %v1066_v10 = vmul.f32 %v1063_v54, %v1717_v40  ;;  %v1088_v56 = vsel %vm1083_vm3, %v1063_v54, %v1086_v53 }
 0xaf0   :  { %1109 = vrot.lane.b32.xlu1 %v1088_v56, %s1460_s13 }
 0xaf1   :  { %v1080_v57 = vadd.f32 %v1078_v55, %v1066_v10 }
 0xaf2   :  { %v1092_v58 = vpop.permute.xlu1 %1091 }
 0xaf3   :  { %v1113_v39 = vsel %vm146_vm1, %v1079_v52, %v1092_v58 }
 0xaf6   :  { %v1094_v59 = vpop.permute.xlu1 %1093 }
 0xaf7   :  { %v1114_v37 = vsel %vm146_vm1, %v1080_v57, %v1094_v59 }
 0xafa   :  { %v1100_v41 = vpop.permute.xlu1 %1099 }
 0xafb   :  { %v1115_v61 = vsel %vm74_vm0, %v1113_v39, %v1100_v41 }
 0xafe   :  { %v1102_v60 = vpop.permute.xlu1 %1101 }
 0xaff   :  { %v1116_v40 = vsel %vm74_vm0, %v1114_v37, %v1102_v60 }
 0xb5e   :  { %v1108_v62 = vpop.permute.xlu1 %1107 }
 0xb5f   :  { %v1118_v63 = vsel %vm1117_vm4, %v1115_v61, %v1108_v62 }
 0xb60   :  { %1120 = vst [vmem:[%s1762_s6] sm:$0xff] %v1118_v63 }
 0xb62   :  { %v1110_v0 = vpop.permute.xlu1 %1109 }
 0xb63   :  { %v1119_v1 = vsel %vm1117_vm4, %v1116_v40, %v1110_v0 }
 0xb64   :  { %1121 = vst [vmem:[%s1762_s6 + $0x8] sm:$0xff] %v1119_v1 }

</bundles_post_ra>
